<compile_context>
chip_gen: v7x
topology: tpu7x:2x2x1
jax: 0.10.0
libtpu: 0.0.40
codegen_flags: <defaults>
</compile_context>

<pallas_src>
import functools

import jax
import jax.numpy as jnp
from jax.experimental import pallas as pl
from jax.experimental.pallas import tpu as pltpu

BN_EPS = 1e-5


def _round_up(x, m):
    return (x + m - 1) // m * m


def _context_matmul(x_ref, w_ref, *, ctx, l_bound, stride, tl, cd):
    """acc[r, :] = sum_k x[l_bound + ck + (j*tl + r)*stride, :] @ W_k  (f32 acc)."""
    j = pl.program_id(1)
    hp = w_ref.shape[-1]
    acc = jnp.zeros((tl, hp), jnp.float32)
    base = j * (tl * stride)
    for k, ck in enumerate(ctx):          # K is tiny and static -> unrolled
        start = base + (l_bound + ck)
        if stride == 1:
            xw = x_ref[pl.ds(start, tl), :]
        else:
            # Strided sublane load; only exercised for stride > 1 configs.
            xw = x_ref[pl.ds(start, tl, stride=stride), :]
        acc = acc + jnp.dot(xw.astype(cd), w_ref[k],
                            preferred_element_type=jnp.float32)
    return acc


def _stats_kernel(x_ref, w_ref, side_ref, stats_ref, *,
                  ctx, l_bound, stride, tl, lp, cd):
    """Pass 1: per-tile partial (sum, sum of squares) of y = relu(ctx-matmul + b)."""
    j = pl.program_id(1)
    acc = _context_matmul(x_ref, w_ref, ctx=ctx, l_bound=l_bound,
                          stride=stride, tl=tl, cd=cd)
    y = jnp.maximum(acc + side_ref[0:1, :], 0.0)
    # Mask rows beyond the true number of output frames (padded tail tile only).
    row = jax.lax.broadcasted_iota(jnp.int32, (tl, 1), 0)
    y = jnp.where(j * tl + row < lp, y, 0.0)
    s1 = jnp.sum(y, axis=0, keepdims=True)        # [1, Hp]
    s2 = jnp.sum(y * y, axis=0, keepdims=True)    # [1, Hp]
    # Single unmasked (8, Hp) store (rows 2..7 are zero padding).
    stats_ref[...] = jnp.concatenate(
        [s1, s2, jnp.zeros((6, y.shape[-1]), jnp.float32)], axis=0)


def _apply_kernel(x_ref, w_ref, side_ref, o_ref, *,
                  ctx, l_bound, stride, tl, cd):
    """Pass 2: y = relu(ctx-matmul + b); out = y * scale + shift (fused BN affine)."""
    acc = _context_matmul(x_ref, w_ref, ctx=ctx, l_bound=l_bound,
                          stride=stride, tl=tl, cd=cd)
    y = jnp.maximum(acc + side_ref[0:1, :], 0.0)
    # Dropout(p=0.0) -> identity.
    # TODO(synk): train-mode dropout with p > 0 (stochastic mask) not modeled.
    o_ref[...] = (y * side_ref[1:2, :] + side_ref[2:3, :]).astype(o_ref.dtype)


def _vmem_limit_bytes():
    """Generation-aware scoped-VMEM limit (v7x: 64 MiB physical vs 128 MiB)."""
    try:
        cap = int(pltpu.get_tpu_info().vmem_capacity_bytes)
        return int(min(cap // 2, 96 * 1024 * 1024))
    except Exception:
        return 32 * 1024 * 1024


def tdnn_layer_forward(x, w, b, gamma, beta, *, context_idxs, stride,
                       compute_dtype=jnp.bfloat16, out_dtype=None):
    """x: [B, L, D] -> [B, L', H], matching TDNNLayer.forward (relu, dropout
    p=0, BatchNorm1d with training-mode batch statistics)."""
    B, L, D = x.shape
    ctx = sorted(list(context_idxs))
    K = len(ctx)
    C, H = w.shape
    assert C == K * D, "weight must be [mfcc_dim * len(context), output_dim]"

    cd = jnp.dtype(compute_dtype)
    out_dtype = jnp.dtype(out_dtype) if out_dtype is not None else jnp.dtype(x.dtype)

    # ---- viable indices (static) ----
    l_bound = -min(ctx)
    u_bound = L - max(ctx)
    Lp = len(range(l_bound, u_bound, stride))
    M = B * Lp

    # ---- output-lane padding only when it is (nearly) free ----
    hp_cand = _round_up(H, 128)
    Hp = hp_cand if (H >= 128 and (hp_cand - H) * 8 <= H) else H

    # ---- generation-aware VMEM budget -> frame-tile size ----
    vmem_limit = _vmem_limit_bytes()
    x_bytes = jnp.dtype(x.dtype).itemsize
    w_bytes = cd.itemsize
    o_bytes = out_dtype.itemsize
    budget = int(vmem_limit * 0.7)
    fixed = 2 * L * D * x_bytes + 2 * K * D * Hp * w_bytes + 4 * 8 * Hp * 4
    per_row = (2 * Hp * o_bytes + 3 * Hp * 4
               + 2 * K * D * x_bytes + 2 * stride * D * x_bytes)
    tl_cap = max(8, ((budget - fixed) // per_row) // 8 * 8)
    if Lp <= tl_cap:
        tl = Lp                         # one tile per batch: no padding at all
    else:
        tl = min(tl_cap, 8192)
    num_ltiles = -(-Lp // tl)
    if B * num_ltiles < 2 and Lp >= 16:
        # Keep >= 2 grid steps so both v7x TensorCores get work.
        tl = _round_up((Lp + 1) // 2, 8)
        num_ltiles = -(-Lp // tl)
    Lp_pad = num_ltiles * tl

    # ---- pad x along L only if the (rare) ragged tail tile needs a halo ----
    # TODO(synk): for very long sequences the full per-batch x block could be
    # replaced by an Element-indexed halo block / manual make_async_copy.
    x_in, Lx = x, L
    if Lp_pad != Lp:
        L_need = l_bound + max(ctx) + (Lp_pad - 1) * stride + 1
        if L_need > L:
            x_in = jnp.pad(x, ((0, 0), (0, L_need - L), (0, 0)))
            Lx = L_need

    # ---- parameters: per-context weights (K, D, Hp), stacked side rows ----
    w_r = w.reshape(K, D, H).astype(cd)            # context-major, matches view(B,-1)
    b_p = b.astype(jnp.float32)
    gamma_p = gamma.astype(jnp.float32)
    beta_p = beta.astype(jnp.float32)
    if Hp != H:
        w_r = jnp.pad(w_r, ((0, 0), (0, 0), (0, Hp - H)))
        b_p = jnp.pad(b_p, (0, Hp - H))
        gamma_p = jnp.pad(gamma_p, (0, Hp - H))
        beta_p = jnp.pad(beta_p, (0, Hp - H))
    side1 = jnp.concatenate([b_p[None], jnp.zeros((7, Hp), jnp.float32)], axis=0)

    cparams = pltpu.CompilerParams(
        dimension_semantics=("parallel", "parallel"),   # megacore on v7x
        vmem_limit_bytes=vmem_limit,
    )

    x_spec = pl.BlockSpec((None, Lx, D), lambda bi, j: (bi, 0, 0))   # resident per batch
    w_spec = pl.BlockSpec((K, D, Hp), lambda bi, j: (0, 0, 0))       # resident
    s_spec = pl.BlockSpec((8, Hp), lambda bi, j: (0, 0))             # stacked side rows

    flops = 2 * B * Lp_pad * K * D * Hp
    in_bytes = B * Lx * D * x_bytes + K * D * Hp * w_bytes + 8 * Hp * 4

    # ---- pass 1: per-tile partial (sum, sum of squares) over frames ----
    stats = pl.pallas_call(
        functools.partial(_stats_kernel, ctx=tuple(ctx), l_bound=l_bound,
                          stride=stride, tl=tl, lp=Lp, cd=cd),
        out_shape=jax.ShapeDtypeStruct((B, num_ltiles, 8, Hp), jnp.float32),
        grid=(B, num_ltiles),
        in_specs=[x_spec, w_spec, s_spec],
        out_specs=pl.BlockSpec((None, None, 8, Hp), lambda bi, j: (bi, j, 0, 0)),
        compiler_params=cparams,
        cost_estimate=pl.CostEstimate(
            flops=flops, transcendentals=0,
            bytes_accessed=in_bytes + B * num_ltiles * 8 * Hp * 4),
    )(x_in, w_r, side1)

    # ---- tiny per-channel finalize in JAX: fused BN scale / shift ----
    s1 = jnp.sum(stats[:, :, 0, :], axis=(0, 1))
    s2 = jnp.sum(stats[:, :, 1, :], axis=(0, 1))
    mean = s1 / M
    # TODO(synk): E[y^2]-E[y]^2 can cancel for very large M (~1e6); Chan-style
    # centered per-tile partials would be more robust in that regime.
    var = jnp.maximum(s2 / M - mean * mean, 0.0)     # biased var (train-mode BN)
    inv_std = jax.lax.rsqrt(var + BN_EPS)
    scale = gamma_p * inv_std
    shift = beta_p - mean * scale
    # TODO(synk): running_mean / running_var buffer updates are not produced
    # (forward output does not depend on them in training mode).
    side2 = jnp.concatenate(
        [b_p[None], scale[None], shift[None], jnp.zeros((5, Hp), jnp.float32)],
        axis=0)                                                      # (8, Hp)

    # ---- pass 2: recompute the cheap matmul, apply fused normalize ----
    out_p = pl.pallas_call(
        functools.partial(_apply_kernel, ctx=tuple(ctx), l_bound=l_bound,
                          stride=stride, tl=tl, cd=cd),
        out_shape=jax.ShapeDtypeStruct((B, Lp_pad, Hp), out_dtype),
        grid=(B, num_ltiles),
        in_specs=[x_spec, w_spec, s_spec],
        out_specs=pl.BlockSpec((None, tl, Hp), lambda bi, j: (bi, j, 0)),
        compiler_params=cparams,
        cost_estimate=pl.CostEstimate(
            flops=flops, transcendentals=0,
            bytes_accessed=in_bytes + B * Lp_pad * Hp * o_bytes),
    )(x_in, w_r, side2)

    # No-copy when Lp_pad == Lp and Hp == H (the common case).
    return out_p[:, :Lp, :H]


def tdnn_reference(x, w, b, gamma, beta, *, context_idxs, stride):
    """Pure-JAX reference mirroring the PyTorch forward (relu, dropout p=0, BN train)."""
    B, L, D = x.shape
    ctx = sorted(list(context_idxs))
    l_bound = -min(ctx)
    u_bound = L - max(ctx)
    viable = jnp.asarray(list(range(l_bound, u_bound, stride)), dtype=jnp.int32)
    cols = [jnp.take(x, viable + ci, axis=1) for ci in ctx]
    layers_input = jnp.stack(cols, axis=2).reshape(B, viable.shape[0], len(ctx) * D)
    y = jnp.maximum(layers_input @ w + b, 0.0)
    mean = jnp.mean(y, axis=(0, 1), keepdims=True)
    var = jnp.mean((y - mean) ** 2, axis=(0, 1), keepdims=True)
    return (y - mean) / jnp.sqrt(var + BN_EPS) * gamma + beta


if __name__ == "__main__":
    # Module hyperparameters (small, consistent with the PyTorch module)
    B, L, D = 2, 16, 8            # batch, sequence length, mfcc_dim
    H = 16                        # output_dim
    context_idxs = [-1, 0, 2]     # TDNN context
    stride = 1
    # non_lin_func = 'relu', dropout = 0.0

    key = jax.random.PRNGKey(0)
    kx, kw, kb = jax.random.split(key, 3)

    x = jax.random.normal(kx, (B, L, D), dtype=jnp.float32)

    # Linear params: PyTorch weight is [H, in]; we store the transpose [in, H].
    C = D * len(context_idxs)
    bound = 1.0 / jnp.sqrt(C)
    w = jax.random.uniform(kw, (C, H), minval=-bound, maxval=bound, dtype=jnp.float32)
    b = jax.random.uniform(kb, (H,), minval=-bound, maxval=bound, dtype=jnp.float32)

    # BatchNorm1d affine params (PyTorch default init)
    gamma = jnp.ones((H,), dtype=jnp.float32)
    beta = jnp.zeros((H,), dtype=jnp.float32)

    ref = tdnn_reference(x, w, b, gamma, beta, context_idxs=context_idxs, stride=stride)
    Lp = L - (-min(context_idxs)) - max(context_idxs)

    # Exact-math path (f32 compute / f32 out) -- tight check vs reference.
    fwd_f32 = jax.jit(functools.partial(
        tdnn_layer_forward, context_idxs=tuple(context_idxs), stride=stride,
        compute_dtype=jnp.float32))
    out_f32 = jax.block_until_ready(fwd_f32(x, w, b, gamma, beta))
    assert out_f32.shape == (B, Lp, H)
    assert jnp.allclose(out_f32, ref, atol=1e-4, rtol=1e-4), "f32 mismatch vs reference"

    # Default bandwidth-optimized path (bf16 x in HBM, bf16 MXU, bf16 out) --
    # this is the configuration the perf feedback targets; loose sanity check.
    fwd = jax.jit(functools.partial(
        tdnn_layer_forward, context_idxs=tuple(context_idxs), stride=stride))
    out_bf16 = jax.block_until_ready(fwd(x.astype(jnp.bfloat16), w, b, gamma, beta))
    assert out_bf16.shape == (B, Lp, H)
    assert float(jnp.max(jnp.abs(out_bf16.astype(jnp.float32) - ref))) < 0.1, \
        "bf16 path diverged"

    print("KERNEL_OK")
</pallas_src>

<mosaic_0001>
module attributes {stable_mosaic.version = 11 : i64} {
  func.func @_apply_kernel(%arg0: i32, %arg1: i32, %arg2: memref<1x16x8xf32, #tpu.memory_space<vmem>>, %arg3: memref<3x8x16xf32, #tpu.memory_space<vmem>>, %arg4: memref<8x16xf32, #tpu.memory_space<vmem>>, %arg5: memref<1x13x16xf32, #tpu.memory_space<vmem>>) attributes {dimension_semantics = [#tpu.dimension_semantics<parallel>, #tpu.dimension_semantics<parallel>], iteration_bounds = array<i64: 2, 1>, scalar_prefetch = 0 : i64, scratch_operands = 0 : i64, tpu.core_type = #tpu.core_type<tc>, window_params = [{transform_indices = @transform_0, window_bounds = array<i64: 1, 16, 8>}, {pipeline_mode = #tpu.pipeline_mode<synchronous>, transform_indices = @transform_1, window_bounds = array<i64: 3, 8, 16>}, {pipeline_mode = #tpu.pipeline_mode<synchronous>, transform_indices = @transform_2, window_bounds = array<i64: 8, 16>}, {transform_indices = @transform_3, window_bounds = array<i64: 1, 13, 16>}]} {
    %cst = arith.constant 0.000000e+00 : f32
    %0 = vector.broadcast %cst : f32 to vector<13x16xf32>
    %c13_i32 = arith.constant 13 : i32
    %1 = arith.muli %arg1, %c13_i32 : i32
    %c0_i32 = arith.constant 0 : i32
    %2 = arith.addi %1, %c0_i32 : i32
    %c0 = arith.constant 0 : index
    %3 = arith.index_cast %2 : i32 to index
    %c0_0 = arith.constant 0 : index
    %4 = vector.load %arg2[%c0, %3, %c0_0] : memref<1x16x8xf32, #tpu.memory_space<vmem>>, vector<1x13x8xf32>
    %5 = vector.shape_cast %4 : vector<1x13x8xf32> to vector<13x8xf32>
    %c0_1 = arith.constant 0 : index
    %c0_2 = arith.constant 0 : index
    %c0_3 = arith.constant 0 : index
    %6 = vector.load %arg3[%c0_1, %c0_2, %c0_3] : memref<3x8x16xf32, #tpu.memory_space<vmem>>, vector<1x8x16xf32>
    %7 = vector.shape_cast %6 : vector<1x8x16xf32> to vector<8x16xf32>
    %cst_4 = arith.constant dense<0.000000e+00> : vector<13x16xf32>
    %8 = tpu.matmul %5, %7, %cst_4 {dimension_numbers = #tpu.dot_dimension_numbers<[1], [0], [0], [1], [0, 0, 1, 1], [], []>} : vector<13x8xf32>, vector<8x16xf32>, vector<13x16xf32> -> vector<13x16xf32>
    %9 = arith.addf %0, %8 : vector<13x16xf32>
    %c1_i32 = arith.constant 1 : i32
    %10 = arith.addi %1, %c1_i32 : i32
    %c0_5 = arith.constant 0 : index
    %11 = arith.index_cast %10 : i32 to index
    %c0_6 = arith.constant 0 : index
    %12 = vector.load %arg2[%c0_5, %11, %c0_6] : memref<1x16x8xf32, #tpu.memory_space<vmem>>, vector<1x13x8xf32>
    %13 = vector.shape_cast %12 : vector<1x13x8xf32> to vector<13x8xf32>
    %c1 = arith.constant 1 : index
    %c0_7 = arith.constant 0 : index
    %c0_8 = arith.constant 0 : index
    %14 = vector.load %arg3[%c1, %c0_7, %c0_8] : memref<3x8x16xf32, #tpu.memory_space<vmem>>, vector<1x8x16xf32>
    %15 = vector.shape_cast %14 : vector<1x8x16xf32> to vector<8x16xf32>
    %cst_9 = arith.constant dense<0.000000e+00> : vector<13x16xf32>
    %16 = tpu.matmul %13, %15, %cst_9 {dimension_numbers = #tpu.dot_dimension_numbers<[1], [0], [0], [1], [0, 0, 1, 1], [], []>} : vector<13x8xf32>, vector<8x16xf32>, vector<13x16xf32> -> vector<13x16xf32>
    %17 = arith.addf %9, %16 : vector<13x16xf32>
    %c3_i32 = arith.constant 3 : i32
    %18 = arith.addi %1, %c3_i32 : i32
    %c0_10 = arith.constant 0 : index
    %19 = arith.index_cast %18 : i32 to index
    %c0_11 = arith.constant 0 : index
    %20 = vector.load %arg2[%c0_10, %19, %c0_11] : memref<1x16x8xf32, #tpu.memory_space<vmem>>, vector<1x13x8xf32>
    %21 = vector.shape_cast %20 : vector<1x13x8xf32> to vector<13x8xf32>
    %c2 = arith.constant 2 : index
    %c0_12 = arith.constant 0 : index
    %c0_13 = arith.constant 0 : index
    %22 = vector.load %arg3[%c2, %c0_12, %c0_13] : memref<3x8x16xf32, #tpu.memory_space<vmem>>, vector<1x8x16xf32>
    %23 = vector.shape_cast %22 : vector<1x8x16xf32> to vector<8x16xf32>
    %cst_14 = arith.constant dense<0.000000e+00> : vector<13x16xf32>
    %24 = tpu.matmul %21, %23, %cst_14 {dimension_numbers = #tpu.dot_dimension_numbers<[1], [0], [0], [1], [0, 0, 1, 1], [], []>} : vector<13x8xf32>, vector<8x16xf32>, vector<13x16xf32> -> vector<13x16xf32>
    %25 = arith.addf %17, %24 : vector<13x16xf32>
    %c0_15 = arith.constant 0 : index
    %c0_16 = arith.constant 0 : index
    %26 = vector.load %arg4[%c0_15, %c0_16] : memref<8x16xf32, #tpu.memory_space<vmem>>, vector<1x16xf32>
    %27 = vector.broadcast %26 : vector<1x16xf32> to vector<13x16xf32>
    %28 = arith.addf %25, %27 : vector<13x16xf32>
    %cst_17 = arith.constant 0.000000e+00 : f32
    %29 = vector.broadcast %cst_17 : f32 to vector<13x16xf32>
    %30 = arith.maximumf %28, %29 : vector<13x16xf32>
    %c1_18 = arith.constant 1 : index
    %c0_19 = arith.constant 0 : index
    %31 = vector.load %arg4[%c1_18, %c0_19] : memref<8x16xf32, #tpu.memory_space<vmem>>, vector<1x16xf32>
    %32 = vector.broadcast %31 : vector<1x16xf32> to vector<13x16xf32>
    %33 = arith.mulf %30, %32 : vector<13x16xf32>
    %c2_20 = arith.constant 2 : index
    %c0_21 = arith.constant 0 : index
    %34 = vector.load %arg4[%c2_20, %c0_21] : memref<8x16xf32, #tpu.memory_space<vmem>>, vector<1x16xf32>
    %35 = vector.broadcast %34 : vector<1x16xf32> to vector<13x16xf32>
    %36 = arith.addf %33, %35 : vector<13x16xf32>
    %c0_22 = arith.constant 0 : index
    %c0_23 = arith.constant 0 : index
    %c0_24 = arith.constant 0 : index
    %37 = vector.load %arg5[%c0_22, %c0_23, %c0_24] : memref<1x13x16xf32, #tpu.memory_space<vmem>>, vector<1x13x16xf32>
    %38 = vector.shape_cast %37 : vector<1x13x16xf32> to vector<13x16xf32>
    %39 = vector.shape_cast %36 : vector<13x16xf32> to vector<1x13x16xf32>
    tpu.vector_store %arg5[%c0_22, %c0_23, %c0_24], %39 {strides = array<i32>} : memref<1x13x16xf32, #tpu.memory_space<vmem>>, vector<1x13x16xf32>,
    return
  }
  func.func @transform_0(%arg0: i32, %arg1: i32) -> (i32, i32, i32) {
    %c0_i32 = arith.constant 0 : i32
    %c0_i32_0 = arith.constant 0 : i32
    %c0_i32_1 = arith.constant 0 : i32
    return %arg0, %c0_i32, %c0_i32_0 : i32, i32, i32
  }
  func.func @transform_1(%arg0: i32, %arg1: i32) -> (i32, i32, i32) {
    %c0_i32 = arith.constant 0 : i32
    %c0_i32_0 = arith.constant 0 : i32
    %c0_i32_1 = arith.constant 0 : i32
    %c0_i32_2 = arith.constant 0 : i32
    return %c0_i32, %c0_i32_0, %c0_i32_1 : i32, i32, i32
  }
  func.func @transform_2(%arg0: i32, %arg1: i32) -> (i32, i32) {
    %c0_i32 = arith.constant 0 : i32
    %c0_i32_0 = arith.constant 0 : i32
    %c0_i32_1 = arith.constant 0 : i32
    return %c0_i32, %c0_i32_0 : i32, i32
  }
  func.func @transform_3(%arg0: i32, %arg1: i32) -> (i32, i32, i32) {
    %c0_i32 = arith.constant 0 : i32
    %c0_i32_0 = arith.constant 0 : i32
    return %arg0, %arg1, %c0_i32 : i32, i32, i32
  }
}

module attributes {stable_mosaic.version = 11 : i64} {
  func.func @_stats_kernel(%arg0: i32, %arg1: i32, %arg2: memref<1x16x8xf32, #tpu.memory_space<vmem>>, %arg3: memref<3x8x16xf32, #tpu.memory_space<vmem>>, %arg4: memref<8x16xf32, #tpu.memory_space<vmem>>, %arg5: memref<1x1x8x16xf32, #tpu.memory_space<vmem>>) attributes {dimension_semantics = [#tpu.dimension_semantics<parallel>, #tpu.dimension_semantics<parallel>], iteration_bounds = array<i64: 2, 1>, scalar_prefetch = 0 : i64, scratch_operands = 0 : i64, tpu.core_type = #tpu.core_type<tc>, window_params = [{transform_indices = @transform_0, window_bounds = array<i64: 1, 16, 8>}, {pipeline_mode = #tpu.pipeline_mode<synchronous>, transform_indices = @transform_1, window_bounds = array<i64: 3, 8, 16>}, {pipeline_mode = #tpu.pipeline_mode<synchronous>, transform_indices = @transform_2, window_bounds = array<i64: 8, 16>}, {transform_indices = @transform_3, window_bounds = array<i64: 1, 1, 8, 16>}]} {
    %cst = arith.constant 0.000000e+00 : f32
    %0 = vector.broadcast %cst : f32 to vector<13x16xf32>
    %c13_i32 = arith.constant 13 : i32
    %1 = arith.muli %arg1, %c13_i32 : i32
    %c0_i32 = arith.constant 0 : i32
    %2 = arith.addi %1, %c0_i32 : i32
    %c0 = arith.constant 0 : index
    %3 = arith.index_cast %2 : i32 to index
    %c0_0 = arith.constant 0 : index
    %4 = vector.load %arg2[%c0, %3, %c0_0] : memref<1x16x8xf32, #tpu.memory_space<vmem>>, vector<1x13x8xf32>
    %5 = vector.shape_cast %4 : vector<1x13x8xf32> to vector<13x8xf32>
    %c0_1 = arith.constant 0 : index
    %c0_2 = arith.constant 0 : index
    %c0_3 = arith.constant 0 : index
    %6 = vector.load %arg3[%c0_1, %c0_2, %c0_3] : memref<3x8x16xf32, #tpu.memory_space<vmem>>, vector<1x8x16xf32>
    %7 = vector.shape_cast %6 : vector<1x8x16xf32> to vector<8x16xf32>
    %cst_4 = arith.constant dense<0.000000e+00> : vector<13x16xf32>
    %8 = tpu.matmul %5, %7, %cst_4 {dimension_numbers = #tpu.dot_dimension_numbers<[1], [0], [0], [1], [0, 0, 1, 1], [], []>} : vector<13x8xf32>, vector<8x16xf32>, vector<13x16xf32> -> vector<13x16xf32>
    %9 = arith.addf %0, %8 : vector<13x16xf32>
    %c1_i32 = arith.constant 1 : i32
    %10 = arith.addi %1, %c1_i32 : i32
    %c0_5 = arith.constant 0 : index
    %11 = arith.index_cast %10 : i32 to index
    %c0_6 = arith.constant 0 : index
    %12 = vector.load %arg2[%c0_5, %11, %c0_6] : memref<1x16x8xf32, #tpu.memory_space<vmem>>, vector<1x13x8xf32>
    %13 = vector.shape_cast %12 : vector<1x13x8xf32> to vector<13x8xf32>
    %c1 = arith.constant 1 : index
    %c0_7 = arith.constant 0 : index
    %c0_8 = arith.constant 0 : index
    %14 = vector.load %arg3[%c1, %c0_7, %c0_8] : memref<3x8x16xf32, #tpu.memory_space<vmem>>, vector<1x8x16xf32>
    %15 = vector.shape_cast %14 : vector<1x8x16xf32> to vector<8x16xf32>
    %cst_9 = arith.constant dense<0.000000e+00> : vector<13x16xf32>
    %16 = tpu.matmul %13, %15, %cst_9 {dimension_numbers = #tpu.dot_dimension_numbers<[1], [0], [0], [1], [0, 0, 1, 1], [], []>} : vector<13x8xf32>, vector<8x16xf32>, vector<13x16xf32> -> vector<13x16xf32>
    %17 = arith.addf %9, %16 : vector<13x16xf32>
    %c3_i32 = arith.constant 3 : i32
    %18 = arith.addi %1, %c3_i32 : i32
    %c0_10 = arith.constant 0 : index
    %19 = arith.index_cast %18 : i32 to index
    %c0_11 = arith.constant 0 : index
    %20 = vector.load %arg2[%c0_10, %19, %c0_11] : memref<1x16x8xf32, #tpu.memory_space<vmem>>, vector<1x13x8xf32>
    %21 = vector.shape_cast %20 : vector<1x13x8xf32> to vector<13x8xf32>
    %c2 = arith.constant 2 : index
    %c0_12 = arith.constant 0 : index
    %c0_13 = arith.constant 0 : index
    %22 = vector.load %arg3[%c2, %c0_12, %c0_13] : memref<3x8x16xf32, #tpu.memory_space<vmem>>, vector<1x8x16xf32>
    %23 = vector.shape_cast %22 : vector<1x8x16xf32> to vector<8x16xf32>
    %cst_14 = arith.constant dense<0.000000e+00> : vector<13x16xf32>
    %24 = tpu.matmul %21, %23, %cst_14 {dimension_numbers = #tpu.dot_dimension_numbers<[1], [0], [0], [1], [0, 0, 1, 1], [], []>} : vector<13x8xf32>, vector<8x16xf32>, vector<13x16xf32> -> vector<13x16xf32>
    %25 = arith.addf %17, %24 : vector<13x16xf32>
    %c0_15 = arith.constant 0 : index
    %c0_16 = arith.constant 0 : index
    %26 = vector.load %arg4[%c0_15, %c0_16] : memref<8x16xf32, #tpu.memory_space<vmem>>, vector<1x16xf32>
    %27 = vector.broadcast %26 : vector<1x16xf32> to vector<13x16xf32>
    %28 = arith.addf %25, %27 : vector<13x16xf32>
    %cst_17 = arith.constant 0.000000e+00 : f32
    %29 = vector.broadcast %cst_17 : f32 to vector<13x16xf32>
    %30 = arith.maximumf %28, %29 : vector<13x16xf32>
    %31 = tpu.iota {dimensions = array<i32: 0>} : vector<13x1xi32>
    %c13_i32_18 = arith.constant 13 : i32
    %32 = arith.muli %arg1, %c13_i32_18 : i32
    %33 = vector.broadcast %32 : i32 to vector<13x1xi32>
    %34 = arith.addi %33, %31 : vector<13x1xi32>
    %c13_i32_19 = arith.constant 13 : i32
    %35 = vector.broadcast %c13_i32_19 : i32 to vector<13x1xi32>
    %36 = arith.cmpi slt, %34, %35 : vector<13x1xi32>
    %cst_20 = arith.constant 0.000000e+00 : f32
    %37 = vector.shape_cast %36 : vector<13x1xi1> to vector<13x1xi1>
    %38 = vector.broadcast %37 : vector<13x1xi1> to vector<13x16xi1>
    %39 = vector.broadcast %cst_20 : f32 to vector<13x16xf32>
    %40 = arith.select %38, %30, %39 : vector<13x16xi1>, vector<13x16xf32>
    %cst_21 = arith.constant dense<0.000000e+00> : vector<16xf32>
    %41 = vector.multi_reduction <add>, %40, %cst_21 [0] : vector<13x16xf32> to vector<16xf32>
    %42 = vector.shape_cast %41 : vector<16xf32> to vector<1x16xf32>
    %43 = arith.mulf %40, %40 : vector<13x16xf32>
    %cst_22 = arith.constant dense<0.000000e+00> : vector<16xf32>
    %44 = vector.multi_reduction <add>, %43, %cst_22 [0] : vector<13x16xf32> to vector<16xf32>
    %45 = vector.shape_cast %44 : vector<16xf32> to vector<1x16xf32>
    %cst_23 = arith.constant 0.000000e+00 : f32
    %46 = vector.broadcast %cst_23 : f32 to vector<6x16xf32>
    %47 = tpu.concatenate %42, %45, %46 in 0 : vector<1x16xf32>, vector<1x16xf32>, vector<6x16xf32> -> vector<8x16xf32>
    %c0_24 = arith.constant 0 : index
    %c0_25 = arith.constant 0 : index
    %c0_26 = arith.constant 0 : index
    %c0_27 = arith.constant 0 : index
    %48 = vector.load %arg5[%c0_24, %c0_25, %c0_26, %c0_27] : memref<1x1x8x16xf32, #tpu.memory_space<vmem>>, vector<1x1x8x16xf32>
    %49 = vector.shape_cast %48 : vector<1x1x8x16xf32> to vector<8x16xf32>
    %50 = vector.shape_cast %47 : vector<8x16xf32> to vector<1x1x8x16xf32>
    tpu.vector_store %arg5[%c0_24, %c0_25, %c0_26, %c0_27], %50 {strides = array<i32>} : memref<1x1x8x16xf32, #tpu.memory_space<vmem>>, vector<1x1x8x16xf32>,
    return
  }
  func.func @transform_0(%arg0: i32, %arg1: i32) -> (i32, i32, i32) {
    %c0_i32 = arith.constant 0 : i32
    %c0_i32_0 = arith.constant 0 : i32
    %c0_i32_1 = arith.constant 0 : i32
    return %arg0, %c0_i32, %c0_i32_0 : i32, i32, i32
  }
  func.func @transform_1(%arg0: i32, %arg1: i32) -> (i32, i32, i32) {
    %c0_i32 = arith.constant 0 : i32
    %c0_i32_0 = arith.constant 0 : i32
    %c0_i32_1 = arith.constant 0 : i32
    %c0_i32_2 = arith.constant 0 : i32
    return %c0_i32, %c0_i32_0, %c0_i32_1 : i32, i32, i32
  }
  func.func @transform_2(%arg0: i32, %arg1: i32) -> (i32, i32) {
    %c0_i32 = arith.constant 0 : i32
    %c0_i32_0 = arith.constant 0 : i32
    %c0_i32_1 = arith.constant 0 : i32
    return %c0_i32, %c0_i32_0 : i32, i32
  }
  func.func @transform_3(%arg0: i32, %arg1: i32) -> (i32, i32, i32, i32) {
    %c0_i32 = arith.constant 0 : i32
    %c0_i32_0 = arith.constant 0 : i32
    %c0_i32_1 = arith.constant 0 : i32
    return %arg0, %arg1, %c0_i32, %c0_i32_0 : i32, i32, i32, i32
  }
}

</mosaic_0001>

<bundles_post_ra>
// kernel: tdnn_layer_forward.2
= control target key start
LH: loop header
LB: loop body
LE: loop exit
PB: predicated region body
PF: predicated region fallthrough
CT: control target
= control target key end

     0   :  { %s701_s12 = smov 0   ;;  %s703_s13 = smov 0   ;;  %s753_s0 = inlined_call_operand.vmem [shape: f32[2,16,8], index: 0, kind: input, shape index: {}]   ;;  %s754_s1 = inlined_call_operand.vmem [shape: f32[3,8,16], index: 1, kind: input, shape index: {}]   ;;  %s755_s2 = inlined_call_operand.vmem [shape: f32[8,16], index: 2, kind: input, shape index: {}]   ;;  %s756_s3 = inlined_call_operand.vmem [shape: f32[2,1,8,16], index: 3, kind: output, shape index: {}]  }
   0x1   :  { %s705_s14 = smov 0  }
   0x2 LB: > { %s25_s15 = sadd.s32 1, %s675_s13  ;;  %p585_p0 = scmp.ge.s32.totalorder %s679_s14, 1  ;;  %s679_s14 = sphi %s705_s14, %s13_s14   ;;  %s675_s13 = sphi %s703_s13, %s758_s13   ;;  %s671_s12 = sphi %s701_s12, %s757_s12  }
   0x3   : > { %p27_p1 = scmp.ge.s32.totalorder %s25_s15, 2  ;;  %p151_p2 = scmp.lt.s32.totalorder %s679_s14, 3 }
   0x5   : > { %s760_s15 = smov (%p27_p1, %s25_s15), 0  ;;  %p152_p3 = pnand %p585_p0, %p151_p2 }
   0x6   : > { %v193_v0 = vld [vmem:[%s754_s1] sm:$0xff] (!%p152_p3)  ;;  %p177_p4 = scmp.lt.s32.totalorder (!%p152_p3), %s671_s12, 1  ;;  %v598_v1 = vld [vmem:[%s754_s1 + $0x10] sm:$0xff] (!%p152_p3)  ;;  %v591_v2 = vld [vmem:[%s754_s1 + $0x8] sm:$0xff] (!%p152_p3)  ;;  %vm200_vm0 = vcmask (!%p152_p3), 64512   ;;  %v461_v10 = vlaneseq (!%p152_p3)  ;;  %vm477_vm2 = vcmask (!%p152_p3), 126976  }
   0x7   : > { %155 = sbr.rel (%p152_p3) target bundleno = 266 (0x10a), region = 32  ;;  %619 = vmatprep.subr.mxu0 (!%p152_p3), %v193_v0  ;;  %614 = vmatprep.subr.mxu1 (!%p152_p3), %v591_v2  ;;  %v601_v14 = vld [vmem:[%s755_s2] ss:$0 sm:$0xff] (!%p152_p3)  ;;  %vm475_vm3 = vcmask (!%p152_p3), 130048   ;;  %vm497_vm4 = vcmask (!%p152_p3), 1040384   ;;  %vm499_vm5 = vcmask (!%p152_p3), 1041408  }
   0x8   : > { %620 = vmatpush3.msra.mxu0 (!%p152_p3), %v193_v0  ;;  %615 = vmatpush3.msra.mxu1 (!%p152_p3), %v591_v2  ;;  %v462_v12 = vshrl.u32 (!%p152_p3), %v461_v10, 7 }
   0x9   : > { %624 = vmatprep.subr.mxu0 (!%p152_p3), %v598_v1 }
   0xa   : > { %v463_v15 = vadd.s32 (!%p152_p3), 8, %v462_v12 }
   0xc   : > { %vm468_vm1 = vcmp.lt.s32.totalorder (!%p152_p3), %v463_v15, 13 }
   0xe   : > { %s762_s12 = smov (!%p177_p4, %s671_s12), 1 }
   0xf   : > { %s604_s22 = sshll.u32 %s762_s12, 4  ;;  %s588_s28 = sshll.u32 %s762_s12, 3 }
  0x10   : > { %s181_s25 = scalar_lea.vmem %s753_s0, %s604_s22  ;;  %s188_s4 = scalar_lea.vmem %s756_s3, %s588_s28 }
  0x11   : > { %v191_v3 = vld [vmem:[%s181_s25] sm:$0xff]  ;;  %v192_v4 = vld [vmem:[%s181_s25 + $0x8] sm:$0x1f] }
  0x12   : > { %v589_v5 = vld [vmem:[%s181_s25 + $0x1] sm:$0xff]  ;;  %621 = vmatprep.mubr.msk.f32.mxu0 %vm200_vm0, %v191_v3  ;;  %v590_v6 = vld [vmem:[%s181_s25 + $0x9] sm:$0x1f] }
  0x13   : > { %616 = vmatprep.mubr.msk.f32.mxu1 %vm200_vm0, %v589_v5  ;;  %v596_v7 = vld [vmem:[%s181_s25 + $0x3] sm:$0xff]  ;;  %622 = vmatmul.mubr.msk.f32.vlgmr.msra.gmra.mrb[0].mxu0 %vm200_vm0, %v192_v4  ;;  %v597_v8 = vld [vmem:[%s181_s25 + $0xb] sm:$0x1f] }
  0x14   : > { %617 = vmatmul.mubr.msk.f32.vlgmr.msra.gmra.mrb[0].mxu1 %vm200_vm0, %v590_v6  ;;  %625 = vmatpush3.msra.mxu0 %v598_v1 }
  0x15   : > { %626 = vmatprep.mubr.msk.f32.mxu0 %vm200_vm0, %v596_v7 }
  0x1b   : > { %627 = vmatmul.mubr.msk.f32.vlgmr.msra.gmra.mrb[0].mxu0 %vm200_vm0, %v597_v8 }
  0xe7   : > { %v618_v9 = vpop.f32.mrb[0].mxu1 }
  0xe8   : > { %v273_v11 = vpop.f32.mrb[1].mxu1 }
  0xee   : > { %v628_v13 = vpop.f32.mrb[0].mxu0 }
  0xef   : > { %v629_v16 = vadd.f32 %v628_v13, %v618_v9  ;;  %v441_v17 = vpop.f32.mrb[1].mxu0 }
  0xf0   : > { %v630_v18 = vadd.f32 %v441_v17, %v273_v11 }
  0xf1   : > { %v458_v19 = vadd.f32 %v629_v16, %v601_v14 }
  0xf2   : > { %v457_v20 = vadd.f32 %v630_v18, %v601_v14 }
  0xf3   : > { %v460_v21 = vmax.f32 %v458_v19, 0.0 }
  0xf4   : > { %v459_v22 = vmax.f32 %v457_v20, 0.0 }
  0xf5   : > { %v474_v23 = vsel %vm468_vm1, %v460_v21, 0.0 }
  0xf6   : > { %v478_v24 = vsel %vm477_vm2, %v474_v23, 0.0  ;;  %v487_v25 = vmul.f32 %v474_v23, %v474_v23  ;;  %v476_v26 = vsel %vm475_vm3, %v459_v22, 0.0  ;;  %v486_v27 = vmul.f32 %v459_v22, %v459_v22 }
  0xf7   : > { %v479_v28 = vadd.f32 %v478_v24, %v476_v26 }
  0xf8   : > { %v489_v29 = vsel %vm477_vm2, %v487_v25, 0.0  ;;  %v488_v30 = vsel %vm475_vm3, %v486_v27, 0.0 }
  0xf9   : > { %v480_v31 = vrot.slane %v479_v28, 4  ;;  %v490_v32 = vadd.f32 %v489_v29, %v488_v30 }
  0xfb   : > { %v481_v33 = vadd.f32 %v480_v31, %v479_v28  ;;  %v491_v34 = vrot.slane %v490_v32, 4 }
  0xfd   : > { %v482_v35 = vrot.slane %v481_v33, 2  ;;  %v492_v36 = vadd.f32 %v491_v34, %v490_v32 }
  0xff   : > { %v483_v37 = vadd.f32 %v482_v35, %v481_v33  ;;  %v493_v38 = vrot.slane %v492_v36, 2 }
 0x101   : > { %v484_v39 = vrot.slane %v483_v37, 1  ;;  %v494_v40 = vadd.f32 %v493_v38, %v492_v36 }
 0x103   : > { %v495_v41 = vrot.slane %v494_v40, 1  ;;  %v485_v42 = vadd.f32 %v484_v39, %v483_v37 }
 0x105   : > { %v496_v43 = vadd.f32 %v495_v41, %v494_v40 }
 0x107   : > { %v498_v44 = vsel %vm497_vm4, %v485_v42, %v496_v43 }
 0x108   : > { %v500_v45 = vsel %vm499_vm5, %v498_v44, 0.0 }
 0x109   : > { %501 = vst.msk [vmem:[%s188_s4] sm:$0xff] %vm475_vm3, %v500_v45 }
 0x10a PF: > { %s13_s14 = sadd.s32 1, %s679_s14   ;;  %s757_s12 = smov %s675_s13 }
 0x10b   : > { %p10_p5 = scmp.ge.s32.totalorder %s13_s14, 4   ;;  %s758_s13 = smov %s760_s15 }
 0x10d   :  { %12 = sbr.rel (!%p10_p5) target bundleno = 2 (0x2), region = 67 }

// kernel: tdnn_layer_forward.3
= control target key start
LH: loop header
LB: loop body
LE: loop exit
PB: predicated region body
PF: predicated region fallthrough
CT: control target
= control target key end

     0   :  { %s697_s12 = smov 0   ;;  %s699_s13 = smov 0   ;;  %s755_s0 = inlined_call_operand.vmem [shape: f32[2,16,8], index: 0, kind: input, shape index: {}]   ;;  %s756_s1 = inlined_call_operand.vmem [shape: f32[3,8,16], index: 1, kind: input, shape index: {}]   ;;  %s757_s2 = inlined_call_operand.vmem [shape: f32[8,16], index: 2, kind: input, shape index: {}]   ;;  %s758_s3 = inlined_call_operand.vmem [shape: f32[2,13,16], index: 3, kind: output, shape index: {}]  }
   0x1   :  { %s701_s14 = smov 0  }
   0x2 LB: > { %s25_s15 = sadd.s32 1, %s671_s13  ;;  %p577_p0 = scmp.ge.s32.totalorder %s675_s14, 1  ;;  %s675_s14 = sphi %s701_s14, %s13_s14   ;;  %s671_s13 = sphi %s699_s13, %s760_s13   ;;  %s667_s12 = sphi %s697_s12, %s759_s12  }
   0x3   : > { %p27_p1 = scmp.ge.s32.totalorder %s25_s15, 2  ;;  %p151_p2 = scmp.lt.s32.totalorder %s675_s14, 3 }
   0x5   : > { %s762_s15 = smov (%p27_p1, %s25_s15), 0  ;;  %p152_p3 = pnand %p577_p0, %p151_p2 }
   0x6   : > { %v198_v0 = vld [vmem:[%s756_s1] sm:$0xff] (!%p152_p3)  ;;  %p179_p4 = scmp.lt.s32.totalorder (!%p152_p3), %s667_s12, 1  ;;  %v591_v1 = vld [vmem:[%s756_s1 + $0x10] sm:$0xff] (!%p152_p3)  ;;  %v584_v2 = vld [vmem:[%s756_s1 + $0x8] sm:$0xff] (!%p152_p3)  ;;  %vm205_vm0 = vcmask (!%p152_p3), 64512   ;;  %vm482_vm1 = vcmask (!%p152_p3), 126976  }
   0x7   : > { %155 = sbr.rel (%p152_p3) target bundleno = 251 (0xfb), region = 32  ;;  %615 = vmatprep.subr.mxu0 (!%p152_p3), %v198_v0  ;;  %610 = vmatprep.subr.mxu1 (!%p152_p3), %v584_v2  ;;  %v594_v12 = vld [vmem:[%s757_s2] ss:$0 sm:$0xff] (!%p152_p3)  ;;  %v595_v17 = vld [vmem:[%s757_s2 + $0x1] ss:$0 sm:$0xff] (!%p152_p3)  ;;  %vm480_vm2 = vcmask (!%p152_p3), 130048  }
   0x8   : > { %616 = vmatpush3.msra.mxu0 (!%p152_p3), %v198_v0  ;;  %611 = vmatpush3.msra.mxu1 (!%p152_p3), %v584_v2  ;;  %v596_v20 = vld [vmem:[%s757_s2 + $0x2] ss:$0 sm:$0xff] (!%p152_p3) }
   0x9   : > { %620 = vmatprep.subr.mxu0 (!%p152_p3), %v591_v1 }
   0xe   : > { %s764_s12 = smov (!%p179_p4, %s667_s12), 1 }
   0xf   : > { %s599_s22 = sshll.u32 %s764_s12, 4 }
  0x10   : > { %s183_s25 = scalar_lea.vmem %s755_s0, %s599_s22  ;;  %s192_s7 = scalar_lea.vmem %s758_s3, %s599_s22 }
  0x11   : > { %v196_v3 = vld [vmem:[%s183_s25] sm:$0xff]  ;;  %v197_v4 = vld [vmem:[%s183_s25 + $0x8] sm:$0x1f] }
  0x12   : > { %v582_v5 = vld [vmem:[%s183_s25 + $0x1] sm:$0xff]  ;;  %617 = vmatprep.mubr.msk.f32.mxu0 %vm205_vm0, %v196_v3  ;;  %v583_v6 = vld [vmem:[%s183_s25 + $0x9] sm:$0x1f] }
  0x13   : > { %612 = vmatprep.mubr.msk.f32.mxu1 %vm205_vm0, %v582_v5  ;;  %v589_v7 = vld [vmem:[%s183_s25 + $0x3] sm:$0xff]  ;;  %618 = vmatmul.mubr.msk.f32.vlgmr.msra.gmra.mrb[0].mxu0 %vm205_vm0, %v197_v4  ;;  %v590_v8 = vld [vmem:[%s183_s25 + $0xb] sm:$0x1f] }
  0x14   : > { %613 = vmatmul.mubr.msk.f32.vlgmr.msra.gmra.mrb[0].mxu1 %vm205_vm0, %v583_v6  ;;  %621 = vmatpush3.msra.mxu0 %v591_v1 }
  0x15   : > { %622 = vmatprep.mubr.msk.f32.mxu0 %vm205_vm0, %v589_v7 }
  0x1b   : > { %623 = vmatmul.mubr.msk.f32.vlgmr.msra.gmra.mrb[0].mxu0 %vm205_vm0, %v590_v8 }
  0xe7   : > { %v614_v9 = vpop.f32.mrb[0].mxu1 }
  0xe8   : > { %v278_v10 = vpop.f32.mrb[1].mxu1 }
  0xee   : > { %v624_v11 = vpop.f32.mrb[0].mxu0 }
  0xef   : > { %v625_v13 = vadd.f32 %v624_v11, %v614_v9  ;;  %v446_v14 = vpop.f32.mrb[1].mxu0 }
  0xf0   : > { %v626_v15 = vadd.f32 %v446_v14, %v278_v10 }
  0xf1   : > { %v463_v16 = vadd.f32 %v625_v13, %v594_v12 }
  0xf2   : > { %v462_v18 = vadd.f32 %v626_v15, %v594_v12 }
  0xf3   : > { %v465_v19 = vmax.f32 %v463_v16, 0.0 }
  0xf4   : > { %v464_v21 = vmax.f32 %v462_v18, 0.0 }
  0xf5   : > { %v472_v22 = vmul.f32 %v595_v17, %v465_v19 }
  0xf6   : > { %v471_v23 = vmul.f32 %v595_v17, %v464_v21 }
  0xf7   : > { %v479_v24 = vadd.f32 %v596_v20, %v472_v22 }
  0xf8   : > { %v478_v25 = vadd.f32 %v596_v20, %v471_v23 }
  0xf9   : > { %483 = vst.msk [vmem:[%s192_s7 + $0x8] sm:$0x1f] %vm482_vm1, %v479_v24 }
  0xfa   : > { %481 = vst.msk [vmem:[%s192_s7] sm:$0xff] %vm480_vm2, %v478_v25 }
  0xfb PF: > { %s13_s14 = sadd.s32 1, %s675_s14   ;;  %s759_s12 = smov %s671_s13 }
  0xfc   : > { %p10_p5 = scmp.ge.s32.totalorder %s13_s14, 4   ;;  %s760_s13 = smov %s762_s15 }
  0xfe   :  { %12 = sbr.rel (!%p10_p5) target bundleno = 2 (0x2), region = 67 }

</bundles_post_ra>
